<compile_context>
chip_gen: v5e
topology: v5e:2x2
jax: 0.10.0
libtpu: 0.0.40
codegen_flags: <defaults>
</compile_context>

<pallas_src>
import jax
import jax.numpy as jnp
from jax.experimental import pallas as pl
from jax.experimental.pallas import tpu as pltpu


_LANE = 1024          # lane axis width: large multiple of 128 -> unmasked vst
_ROWS_PER_TILE = 512  # 512 x 1024 f32 tile = 2 MiB; ~8 MiB double-buffered in+out


def _scale_kernel(x_ref, o_ref, *, scale: float):
    # Elementwise multiply on the VPU; product rounded once to the output dtype.
    x = x_ref[...]
    o_ref[...] = (x.astype(jnp.float32) * jnp.float32(scale)).astype(o_ref.dtype)


def lr_equalizer(x: jax.Array, in_dim: int, kernel_size: int, alpha: float = 1.0) -> jax.Array:
    """Pallas equivalent of LREquilizer.forward: x * sqrt(alpha / (in_dim * k^2))."""
    scale = (alpha / (in_dim * kernel_size ** 2)) ** 0.5

    orig_shape = x.shape
    orig_dtype = x.dtype
    n = x.size

    # Flatten to a wide, 128-aligned lane-dense 2-D slab.
    rows = pl.cdiv(n, _LANE)
    if rows <= _ROWS_PER_TILE:
        tr = rows                     # single row-tile; full-extent rows allowed for any count
        rows_pad = rows
    else:
        tr = _ROWS_PER_TILE           # multiple of 8 -> satisfies (8,128) divisibility
        rows_pad = pl.cdiv(rows, tr) * tr

    n_pad = rows_pad * _LANE
    x_flat = x.reshape(-1)
    if n_pad != n:
        x_flat = jnp.pad(x_flat, (0, n_pad - n))
    x2d = x_flat.reshape(rows_pad, _LANE)

    grid = (rows_pad // tr,)

    out2d = pl.pallas_call(
        lambda x_ref, o_ref: _scale_kernel(x_ref, o_ref, scale=scale),
        out_shape=jax.ShapeDtypeStruct((rows_pad, _LANE), orig_dtype),
        grid_spec=pltpu.PrefetchScalarGridSpec(
            num_scalar_prefetch=0,
            grid=grid,
            in_specs=[pl.BlockSpec((tr, _LANE), lambda i: (i, 0))],
            out_specs=pl.BlockSpec((tr, _LANE), lambda i: (i, 0)),
        ),
        compiler_params=pltpu.CompilerParams(
            dimension_semantics=("parallel",),
        ),
    )(x2d)

    out_flat = out2d.reshape(-1)
    if n_pad != n:
        out_flat = out_flat[:n]
    return out_flat.reshape(orig_shape)


if __name__ == "__main__":
    key = jax.random.PRNGKey(0)
    in_dim, kernel_size, alpha = 4, 3, 1.0
    scale = (alpha / (in_dim * kernel_size ** 2)) ** 0.5

    # Primary small-shape test (consistent with a conv activation).
    B, Cc, H, W = 2, 4, 16, 16
    x = jax.random.normal(key, (B, Cc, H, W), dtype=jnp.float32)
    out = lr_equalizer(x, in_dim=in_dim, kernel_size=kernel_size, alpha=alpha)
    out = jax.block_until_ready(out)
    ref = x * scale
    assert out.shape == x.shape and out.dtype == x.dtype
    assert jnp.allclose(out, ref, atol=1e-6, rtol=1e-6)

    # Secondary check: non-divisible total that exercises padding + the
    # multi-tile (grid > 1) path.
    x2 = jax.random.normal(jax.random.PRNGKey(1), (8, 16, 64, 65), dtype=jnp.float32)
    out2 = lr_equalizer(x2, in_dim=in_dim, kernel_size=kernel_size, alpha=alpha)
    out2 = jax.block_until_ready(out2)
    ref2 = x2 * scale
    assert out2.shape == x2.shape and out2.dtype == x2.dtype
    assert jnp.allclose(out2, ref2, atol=1e-6, rtol=1e-6)

    print("KERNEL_OK")
</pallas_src>

<mosaic_0001>
module attributes {stable_mosaic.version = 11 : i64} {
  func.func @_lambda_(%arg0: i32, %arg1: memref<2x1024xf32, #tpu.memory_space<vmem>>, %arg2: memref<2x1024xf32, #tpu.memory_space<vmem>>) attributes {dimension_semantics = [#tpu.dimension_semantics<parallel>], iteration_bounds = array<i64: 1>, scalar_prefetch = 0 : i64, scratch_operands = 0 : i64, tpu.core_type = #tpu.core_type<tc>, window_params = [{transform_indices = @transform_0, window_bounds = array<i64: 2, 1024>}, {transform_indices = @transform_1, window_bounds = array<i64: 2, 1024>}]} {
    %c0 = arith.constant 0 : index
    %c0_0 = arith.constant 0 : index
    %0 = vector.load %arg1[%c0, %c0_0] : memref<2x1024xf32, #tpu.memory_space<vmem>>, vector<2x1024xf32>
    %cst = arith.constant 0.166666672 : f32
    %1 = vector.broadcast %cst : f32 to vector<2x1024xf32>
    %2 = arith.mulf %0, %1 : vector<2x1024xf32>
    %c0_1 = arith.constant 0 : index
    %c0_2 = arith.constant 0 : index
    %3 = vector.load %arg2[%c0_1, %c0_2] : memref<2x1024xf32, #tpu.memory_space<vmem>>, vector<2x1024xf32>
    tpu.vector_store %arg2[%c0_1, %c0_2], %2 {strides = array<i32>} : memref<2x1024xf32, #tpu.memory_space<vmem>>, vector<2x1024xf32>,
    return
  }
  func.func @transform_0(%arg0: i32) -> (i32, i32) {
    %c0_i32 = arith.constant 0 : i32
    %c0_i32_0 = arith.constant 0 : i32
    return %arg0, %c0_i32 : i32, i32
  }
  func.func @transform_1(%arg0: i32) -> (i32, i32) {
    %c0_i32 = arith.constant 0 : i32
    %c0_i32_0 = arith.constant 0 : i32
    return %arg0, %c0_i32 : i32, i32
  }
}

</mosaic_0001>

<bundles_post_ra>
// kernel: tpu_custom_call.1
= control target key start
LH: loop header
LB: loop body
LE: loop exit
PB: predicated region body
PF: predicated region fallthrough
CT: control target
= control target key end

     0   :  { %6 = vsyncpa [#allocation3], 0  ;;  %s118_s0 = inlined_call_operand.hbm [shape: f32[2,1024], index: 0, kind: input, shape index: {}]   ;;  %s119_s1 = inlined_call_operand.hbm [shape: f32[2,1024], index: 1, kind: output, shape index: {}]  }
   0x1   :  { %7 = vsyncpa [#allocation4], 0  ;;  %s13_s8 = sshll.u32 %s118_s0, 4  ;;  %s100_s9 = smov [#allocation2]   ;;  %s14_s8 = int_to_ptr.hbm [resolvable:$true] %s13_s8 }
   0x2   :  { %s15_s10 = sshll.u32 %s100_s9, 4  ;;  %s16_s10 = int_to_ptr.vmem [resolvable:$true] %s15_s10 }
   0x3   :  { %18 = dma.hbm_to_vmem [thread:$0]  %s14_s8, 256, %s16_s10, [#allocation3]  }
   0x4   :  { %96 = dma.done.wait [#allocation3], 256  }
   0x5   :  { %97 = vsyncadd [#allocation3], 4294967040  ;;  %s101_s11 = smov [#allocation5]   ;;  %s36_s15 = sshll.u32 %s119_s1, 4  ;;  %v23_v0 = vld [vmem:[#allocation2] sm:$0xff]  ;;  %v24_v1 = vld [vmem:[#allocation2 + $0x8] sm:$0xff]  ;;  %s37_s15 = int_to_ptr.hbm [resolvable:$true] %s36_s15 }
   0x6   :  { %s34_s12 = sshll.u32 %s101_s11, 4  ;;  %v25_v2 = vmul.f32 0.16666667, %v23_v0  ;;  %v26_v3 = vmul.f32 0.16666667, %v24_v1  ;;  %s35_s12 = int_to_ptr.vmem [resolvable:$true] %s34_s12 }
   0x8   :  { %27 = vst [vmem:[#allocation5] sm:$0xff] %v25_v2 }
   0x9   :  { %28 = vst [vmem:[#allocation5 + $0x8] sm:$0xff] %v26_v3 }
   0xa   :  { %39 = dma.vmem_to_hbm [thread:$0]  %s35_s12, 256, %s37_s15, [#allocation4]  }
   0xb   :  { %98 = dma.done.wait [#allocation4], 256  }
   0xc   :  { %99 = vsyncadd [#allocation4], 4294967040 }
   0xd   :  { %44 = vsyncpa [#allocation3], 1 }
   0xe   :  { %45 = vsyncpa [#allocation4], 1 }

</bundles_post_ra>
